<compile_context>
chip_gen: v6e
topology: v6e:2x2x1
jax: 0.10.0
libtpu: 0.0.40
codegen_flags: <defaults>
</compile_context>

<pallas_src>
import functools

import jax
import jax.numpy as jnp
from jax.experimental import pallas as pl
from jax.experimental.pallas import tpu as pltpu


# ---------------------------------------------------------------------------
# VMEM sizing (per-generation: v7x has 64 MiB physical VMEM, v5e/v6e 128 MiB)
# ---------------------------------------------------------------------------
def _vmem_limit_bytes():
    try:
        cap = pltpu.get_tpu_info().vmem_capacity_bytes
    except Exception:  # interpret mode / older jax -> conservative default
        cap = 64 * 1024 * 1024
    return int(min(cap // 2, 64 * 1024 * 1024))


def _choose_ts(s_eff, bytes_per_frame, budget_bytes):
    """Largest divisor of s_eff whose double-buffered input block fits budget."""
    best = 1
    for ts in range(1, s_eff + 1):
        if s_eff % ts == 0 and 2 * ts * bytes_per_frame <= budget_bytes:
            best = ts
    return best


# ---------------------------------------------------------------------------
# HPP: hierarchical per-bin mean+max over a (c, hw) tile (f32), one pass.
# ---------------------------------------------------------------------------
def _hpp_parts(v, hw, bin_num):
    """v: (c, hw) f32 -> list of sum(bin_num) arrays of shape (c,)."""
    bmax = max(bin_num)
    nested = (hw % bmax == 0) and all(bmax % b == 0 for b in bin_num)
    parts = []
    if nested:
        ck = hw // bmax
        fsum = [jnp.sum(v[:, i * ck:(i + 1) * ck], axis=-1) for i in range(bmax)]
        fmax = [jnp.max(v[:, i * ck:(i + 1) * ck], axis=-1) for i in range(bmax)]
        for b in bin_num:
            g = bmax // b
            for j in range(b):
                ssum = fsum[j * g]
                smax = fmax[j * g]
                for k in range(1, g):
                    ssum = ssum + fsum[j * g + k]
                    smax = jnp.maximum(smax, fmax[j * g + k])
                parts.append(ssum * (1.0 / (g * ck)) + smax)
    else:
        # Non-nested bin configuration: direct per-bin reduction.
        for b in bin_num:
            ck = hw // b
            for j in range(b):
                z = v[:, j * ck:(j + 1) * ck]
                parts.append(jnp.mean(z, axis=-1) + jnp.max(z, axis=-1))
    return parts


# ---------------------------------------------------------------------------
# Kernel 1: streamed temporal max (set pooling) fused with the Horizontal
# Pooling Pyramid.  Grid (n, s_eff // Ts): Ts frames of one batch element per
# step; f32 running-max accumulator in VMEM scratch; HPP in the epilogue.
# ---------------------------------------------------------------------------
def _tp_hpp_kernel(x_ref, out_ref, acc_ref, *, hw, bin_num, reduce_rows):
    # x_ref  : (Ts, c_rows, hw)  -- Ts frames of one batch element
    # out_ref: (p, c_feat)       -- resident across the temporal axis
    # acc_ref: (c_rows, hw) f32  -- running temporal max
    t = pl.program_id(1)
    blk_max = jnp.max(x_ref[...].astype(jnp.float32), axis=0)      # (c_rows, hw)

    @pl.when(t == 0)
    def _init():
        acc_ref[...] = blk_max

    @pl.when(t > 0)
    def _update():
        acc_ref[...] = jnp.maximum(acc_ref[...], blk_max)

    @pl.when(t == pl.num_programs(1) - 1)
    def _epilogue():
        v = acc_ref[...]                                            # f32
        if reduce_rows:
            # c == 1 path: rows are folded frames -> finish the temporal max.
            v = jnp.max(v, axis=0, keepdims=True)                   # (1, hw)
        parts = _hpp_parts(v, hw, bin_num)                          # p x (c_feat,)
        out_ref[...] = jnp.stack(parts, axis=0).astype(out_ref.dtype)


def tp_hpp(x_flat, bin_num, *, reduce_rows):
    """x_flat: (n, s_eff, c_rows, hw) -> (n, p, c_feat)."""
    n, s_eff, c_rows, hw = x_flat.shape
    for b in bin_num:
        if hw % b != 0:
            raise ValueError(f"h*w={hw} not divisible by bin count {b} "
                             "(PyTorch view(n, c, b, -1) would fail too)")
    p = sum(bin_num)
    c_feat = 1 if reduce_rows else c_rows

    vmem_limit = _vmem_limit_bytes()
    ts = _choose_ts(s_eff, c_rows * hw * x_flat.dtype.itemsize, vmem_limit // 2)

    kernel = functools.partial(_tp_hpp_kernel, hw=hw, bin_num=tuple(bin_num),
                               reduce_rows=reduce_rows)
    return pl.pallas_call(
        kernel,
        out_shape=jax.ShapeDtypeStruct((n, p, c_feat), x_flat.dtype),
        grid_spec=pltpu.PrefetchScalarGridSpec(
            num_scalar_prefetch=0,
            grid=(n, s_eff // ts),
            in_specs=[pl.BlockSpec((None, ts, c_rows, hw),
                                   lambda i, t: (i, t, 0, 0))],
            out_specs=pl.BlockSpec((None, p, c_feat), lambda i, t: (i, 0, 0)),
            scratch_shapes=[pltpu.VMEM((c_rows, hw), jnp.float32)],
        ),
        compiler_params=pltpu.CompilerParams(
            dimension_semantics=("parallel", "arbitrary"),
            vmem_limit_bytes=vmem_limit),
    )(x_flat)


# ---------------------------------------------------------------------------
# Kernel 2a: SeparateFCs as ONE MXU matmul against a block-diagonal weight.
# ---------------------------------------------------------------------------
def _fc_blockdiag_kernel(x_ref, w_ref, o_ref):
    # x: (n, p*c_in)  w: (p*c_in, c_out*p)  o: (n, c_out*p)
    o_ref[...] = jnp.dot(x_ref[...], w_ref[...],
                         preferred_element_type=jnp.float32).astype(o_ref.dtype)


def fc_block_diag(feat_flat, w_block):
    n, k = feat_flat.shape
    m = w_block.shape[1]
    itemsize = feat_flat.dtype.itemsize
    return pl.pallas_call(
        _fc_blockdiag_kernel,
        out_shape=jax.ShapeDtypeStruct((n, m), feat_flat.dtype),
        in_specs=[pl.BlockSpec(memory_space=pltpu.MemorySpace.VMEM),
                  pl.BlockSpec(memory_space=pltpu.MemorySpace.VMEM)],
        out_specs=pl.BlockSpec(memory_space=pltpu.MemorySpace.VMEM),
        cost_estimate=pl.CostEstimate(
            flops=2 * n * k * m,
            transcendentals=0,
            bytes_accessed=(n * k + k * m + n * m) * itemsize),
    )(feat_flat, w_block)


# ---------------------------------------------------------------------------
# Kernel 2b (fallback for very large p*c): batched per-part einsum in one call.
# ---------------------------------------------------------------------------
def _separate_fcs_kernel(feat_ref, w_ref, out_ref):
    # feat: (n, p, c_in)  w: (p, c_in, c_out)  out: (n, c_out, p)
    out_ref[...] = jnp.einsum(
        'npc,pco->nop', feat_ref[...], w_ref[...],
        preferred_element_type=jnp.float32).astype(out_ref.dtype)


def separate_fcs_batched(feat_npc, fc_w):
    n, p, c_in = feat_npc.shape
    c_out = fc_w.shape[-1]
    itemsize = feat_npc.dtype.itemsize
    return pl.pallas_call(
        _separate_fcs_kernel,
        out_shape=jax.ShapeDtypeStruct((n, c_out, p), feat_npc.dtype),
        in_specs=[pl.BlockSpec(memory_space=pltpu.MemorySpace.VMEM),
                  pl.BlockSpec(memory_space=pltpu.MemorySpace.VMEM)],
        out_specs=pl.BlockSpec(memory_space=pltpu.MemorySpace.VMEM),
        cost_estimate=pl.CostEstimate(
            flops=2 * n * p * c_in * c_out,
            transcendentals=0,
            bytes_accessed=(n * p * c_in + p * c_in * c_out + n * c_out * p) * itemsize),
    )(feat_npc, fc_w)


# ---------------------------------------------------------------------------
# Full forward (host glue is only free reshapes + a tiny one-time weight
# scatter; no transposes of the feature tensor).
# ---------------------------------------------------------------------------
def baseline_mimic_forward(sils, fc_w, bin_num):
    """sils: (n,s,h,w) or (n,s,c,h,w); fc_w: (p, c_in, c_out) -> (n, c_out, p)."""
    # TODO(synk): Backbone is referenced in forward() but never built in
    # build_network() of this mimic component -> identity here.
    # TODO(synk): ragged per-sample sequence lengths (seqL != None in
    # PackSequenceWrapper) are not handled; fixed-length clips only.
    if sils.ndim == 4:
        n, s, h, w = sils.shape
        c = 1
        # c == 1 would use 1/8 sublanes per vreg: fold up to 8 frames onto the
        # sublane axis; the kernel epilogue finishes the fold-axis max.
        fold = 1
        for f in (8, 7, 6, 5, 4, 3, 2):
            if s % f == 0:
                fold = f
                break
        x_flat = sils.reshape(n, s // fold, fold, h * w)     # free reshape
        reduce_rows = True
    else:
        n, s, c, h, w = sils.shape
        x_flat = sils.reshape(n, s, c, h * w)                # free reshape
        reduce_rows = False

    # TODO(synk): for n == 1 on v7x both TensorCores could be used by also
    # splitting the temporal axis across cores (needs a cross-core max merge).
    feat = tp_hpp(x_flat, bin_num, reduce_rows=reduce_rows)  # (n, p, c)

    p = sum(bin_num)
    c_in = c
    c_out = fc_w.shape[-1]

    blockdiag_bytes = (p * c_in) * (c_out * p) * fc_w.dtype.itemsize
    if blockdiag_bytes <= 8 * 1024 * 1024:
        # One MXU-friendly matmul: scatter per-part weights into a
        # block-diagonal (p*c_in, c_out*p) matrix laid out so the flat result
        # reshapes for free into (n, c_out, p).  (In a real deployment this
        # weight transform would be precomputed once, not per forward call.)
        eye = jnp.eye(p, dtype=fc_w.dtype)
        w_block = jnp.einsum('pio,pq->pioq', fc_w, eye).reshape(p * c_in, c_out * p)
        out_flat = fc_block_diag(feat.reshape(n, p * c_in), w_block)
        return out_flat.reshape(n, c_out, p)
    # Very large p*c configs: single batched-einsum kernel instead.
    return separate_fcs_batched(feat, fc_w)


# ---------------------------------------------------------------------------
# Pure-JAX reference for the correctness check.
# ---------------------------------------------------------------------------
def _reference(sils, fc_w, bin_num):
    x = sils[:, :, None] if sils.ndim == 4 else sils       # (n, s, c, h, w)
    outs = jnp.max(x, axis=1)                               # (n, c, h, w)
    n, c, h, w = outs.shape
    feats = []
    for b in bin_num:
        z = outs.reshape(n, c, b, -1)
        feats.append(jnp.mean(z, -1) + jnp.max(z, -1))
    feat = jnp.concatenate(feats, -1)                       # (n, c, p)
    return jnp.einsum('ncp,pco->nop', feat, fc_w)           # (n, c_out, p)


if __name__ == "__main__":
    # Small, module-consistent config.
    n, s, c_in, h, w = 2, 8, 16, 8, 8
    bin_num = [8, 4, 2, 1]                                  # p = 15 horizontal parts
    parts_num = sum(bin_num)
    c_out = 32

    key = jax.random.PRNGKey(0)
    k_x, k_w, k_x2, k_w2 = jax.random.split(key, 4)

    # --- 5-D (multi-channel feature) path -----------------------------------
    sils = jax.random.normal(k_x, (n, s, c_in, h, w), dtype=jnp.float32)
    limit = (6.0 / (c_in + c_out)) ** 0.5                   # xavier_uniform_
    fc_w = jax.random.uniform(k_w, (parts_num, c_in, c_out),
                              minval=-limit, maxval=limit, dtype=jnp.float32)

    embed = jax.block_until_ready(baseline_mimic_forward(sils, fc_w, bin_num))
    ref = _reference(sils, fc_w, bin_num)
    assert embed.shape == (n, c_out, parts_num), embed.shape
    assert jnp.allclose(embed, ref, atol=1e-4, rtol=1e-4), "5-D path mismatch"

    # --- 4-D (single-channel silhouette) path -------------------------------
    sils4 = jax.random.normal(k_x2, (n, s, h, w), dtype=jnp.float32)
    limit4 = (6.0 / (1 + c_out)) ** 0.5
    fc_w4 = jax.random.uniform(k_w2, (parts_num, 1, c_out),
                               minval=-limit4, maxval=limit4, dtype=jnp.float32)

    embed4 = jax.block_until_ready(baseline_mimic_forward(sils4, fc_w4, bin_num))
    ref4 = _reference(sils4, fc_w4, bin_num)
    assert embed4.shape == (n, c_out, parts_num), embed4.shape
    assert jnp.allclose(embed4, ref4, atol=1e-4, rtol=1e-4), "4-D path mismatch"

    print("KERNEL_OK")
</pallas_src>

<mosaic_0001>
module attributes {stable_mosaic.version = 11 : i64} {
  func.func @_tp_hpp_kernel(%arg0: i32, %arg1: i32, %arg2: memref<1x8x16x64xf32, #tpu.memory_space<vmem>>, %arg3: memref<1x15x16xf32, #tpu.memory_space<vmem>>, %arg4: memref<16x64xf32, #tpu.memory_space<vmem>>) attributes {dimension_semantics = [#tpu.dimension_semantics<parallel>, #tpu.dimension_semantics<arbitrary>], iteration_bounds = array<i64: 2, 1>, scalar_prefetch = 0 : i64, scratch_operands = 1 : i64, tpu.core_type = #tpu.core_type<tc>, window_params = [{transform_indices = @transform_0, window_bounds = array<i64: 1, 8, 16, 64>}, {transform_indices = @transform_1, window_bounds = array<i64: 1, 15, 16>}]} {
    %c0 = arith.constant 0 : index
    %c0_0 = arith.constant 0 : index
    %c0_1 = arith.constant 0 : index
    %c0_2 = arith.constant 0 : index
    %0 = vector.load %arg2[%c0, %c0_0, %c0_1, %c0_2] : memref<1x8x16x64xf32, #tpu.memory_space<vmem>>, vector<1x8x16x64xf32>
    %1 = vector.shape_cast %0 : vector<1x8x16x64xf32> to vector<8x16x64xf32>
    %cst = arith.constant dense<0xFF800000> : vector<16x64xf32>
    %2 = vector.multi_reduction <maximumf>, %1, %cst [0] : vector<8x16x64xf32> to vector<16x64xf32>
    %c0_i32 = arith.constant 0 : i32
    %3 = arith.cmpi eq, %arg1, %c0_i32 : i32
    %4 = arith.extui %3 : i1 to i32
    %c0_i32_3 = arith.constant 0 : i32
    %5 = arith.cmpi ne, %4, %c0_i32_3 : i32
    scf.if %5 {
      %c0_8 = arith.constant 0 : index
      %c0_9 = arith.constant 0 : index
      %12 = vector.load %arg4[%c0_8, %c0_9] : memref<16x64xf32, #tpu.memory_space<vmem>>, vector<16x64xf32>
      tpu.vector_store %arg4[%c0_8, %c0_9], %2 {strides = array<i32>} : memref<16x64xf32, #tpu.memory_space<vmem>>, vector<16x64xf32>,
    } else {
    }
    %c0_i32_4 = arith.constant 0 : i32
    %6 = arith.cmpi sgt, %arg1, %c0_i32_4 : i32
    %7 = arith.extui %6 : i1 to i32
    %c0_i32_5 = arith.constant 0 : i32
    %8 = arith.cmpi ne, %7, %c0_i32_5 : i32
    scf.if %8 {
      %c0_8 = arith.constant 0 : index
      %c0_9 = arith.constant 0 : index
      %12 = vector.load %arg4[%c0_8, %c0_9] : memref<16x64xf32, #tpu.memory_space<vmem>>, vector<16x64xf32>
      %13 = arith.maximumf %12, %2 : vector<16x64xf32>
      %c0_10 = arith.constant 0 : index
      %c0_11 = arith.constant 0 : index
      %14 = vector.load %arg4[%c0_10, %c0_11] : memref<16x64xf32, #tpu.memory_space<vmem>>, vector<16x64xf32>
      tpu.vector_store %arg4[%c0_10, %c0_11], %13 {strides = array<i32>} : memref<16x64xf32, #tpu.memory_space<vmem>>, vector<16x64xf32>,
    } else {
    }
    %c0_i32_6 = arith.constant 0 : i32
    %9 = arith.cmpi eq, %arg1, %c0_i32_6 : i32
    %10 = arith.extui %9 : i1 to i32
    %c0_i32_7 = arith.constant 0 : i32
    %11 = arith.cmpi ne, %10, %c0_i32_7 : i32
    scf.if %11 {
      %c0_8 = arith.constant 0 : index
      %c0_9 = arith.constant 0 : index
      %12 = vector.load %arg4[%c0_8, %c0_9] : memref<16x64xf32, #tpu.memory_space<vmem>>, vector<16x64xf32>
      %13 = vector.extract_strided_slice %12 {offsets = [0, 0], sizes = [16, 8], strides = [1, 1]} : vector<16x64xf32> to vector<16x8xf32>
      %cst_10 = arith.constant dense<0.000000e+00> : vector<16xf32>
      %14 = vector.multi_reduction <add>, %13, %cst_10 [1] : vector<16x8xf32> to vector<16xf32>
      %15 = vector.extract_strided_slice %12 {offsets = [0, 8], sizes = [16, 8], strides = [1, 1]} : vector<16x64xf32> to vector<16x8xf32>
      %cst_11 = arith.constant dense<0.000000e+00> : vector<16xf32>
      %16 = vector.multi_reduction <add>, %15, %cst_11 [1] : vector<16x8xf32> to vector<16xf32>
      %17 = vector.extract_strided_slice %12 {offsets = [0, 16], sizes = [16, 8], strides = [1, 1]} : vector<16x64xf32> to vector<16x8xf32>
      %cst_12 = arith.constant dense<0.000000e+00> : vector<16xf32>
      %18 = vector.multi_reduction <add>, %17, %cst_12 [1] : vector<16x8xf32> to vector<16xf32>
      %19 = vector.extract_strided_slice %12 {offsets = [0, 24], sizes = [16, 8], strides = [1, 1]} : vector<16x64xf32> to vector<16x8xf32>
      %cst_13 = arith.constant dense<0.000000e+00> : vector<16xf32>
      %20 = vector.multi_reduction <add>, %19, %cst_13 [1] : vector<16x8xf32> to vector<16xf32>
      %21 = vector.extract_strided_slice %12 {offsets = [0, 32], sizes = [16, 8], strides = [1, 1]} : vector<16x64xf32> to vector<16x8xf32>
      %cst_14 = arith.constant dense<0.000000e+00> : vector<16xf32>
      %22 = vector.multi_reduction <add>, %21, %cst_14 [1] : vector<16x8xf32> to vector<16xf32>
      %23 = vector.extract_strided_slice %12 {offsets = [0, 40], sizes = [16, 8], strides = [1, 1]} : vector<16x64xf32> to vector<16x8xf32>
      %cst_15 = arith.constant dense<0.000000e+00> : vector<16xf32>
      %24 = vector.multi_reduction <add>, %23, %cst_15 [1] : vector<16x8xf32> to vector<16xf32>
      %25 = vector.extract_strided_slice %12 {offsets = [0, 48], sizes = [16, 8], strides = [1, 1]} : vector<16x64xf32> to vector<16x8xf32>
      %cst_16 = arith.constant dense<0.000000e+00> : vector<16xf32>
      %26 = vector.multi_reduction <add>, %25, %cst_16 [1] : vector<16x8xf32> to vector<16xf32>
      %27 = vector.extract_strided_slice %12 {offsets = [0, 56], sizes = [16, 8], strides = [1, 1]} : vector<16x64xf32> to vector<16x8xf32>
      %cst_17 = arith.constant dense<0.000000e+00> : vector<16xf32>
      %28 = vector.multi_reduction <add>, %27, %cst_17 [1] : vector<16x8xf32> to vector<16xf32>
      %29 = vector.extract_strided_slice %12 {offsets = [0, 0], sizes = [16, 8], strides = [1, 1]} : vector<16x64xf32> to vector<16x8xf32>
      %cst_18 = arith.constant dense<0xFF800000> : vector<16xf32>
      %30 = vector.multi_reduction <maximumf>, %29, %cst_18 [1] : vector<16x8xf32> to vector<16xf32>
      %31 = vector.extract_strided_slice %12 {offsets = [0, 8], sizes = [16, 8], strides = [1, 1]} : vector<16x64xf32> to vector<16x8xf32>
      %cst_19 = arith.constant dense<0xFF800000> : vector<16xf32>
      %32 = vector.multi_reduction <maximumf>, %31, %cst_19 [1] : vector<16x8xf32> to vector<16xf32>
      %33 = vector.extract_strided_slice %12 {offsets = [0, 16], sizes = [16, 8], strides = [1, 1]} : vector<16x64xf32> to vector<16x8xf32>
      %cst_20 = arith.constant dense<0xFF800000> : vector<16xf32>
      %34 = vector.multi_reduction <maximumf>, %33, %cst_20 [1] : vector<16x8xf32> to vector<16xf32>
      %35 = vector.extract_strided_slice %12 {offsets = [0, 24], sizes = [16, 8], strides = [1, 1]} : vector<16x64xf32> to vector<16x8xf32>
      %cst_21 = arith.constant dense<0xFF800000> : vector<16xf32>
      %36 = vector.multi_reduction <maximumf>, %35, %cst_21 [1] : vector<16x8xf32> to vector<16xf32>
      %37 = vector.extract_strided_slice %12 {offsets = [0, 32], sizes = [16, 8], strides = [1, 1]} : vector<16x64xf32> to vector<16x8xf32>
      %cst_22 = arith.constant dense<0xFF800000> : vector<16xf32>
      %38 = vector.multi_reduction <maximumf>, %37, %cst_22 [1] : vector<16x8xf32> to vector<16xf32>
      %39 = vector.extract_strided_slice %12 {offsets = [0, 40], sizes = [16, 8], strides = [1, 1]} : vector<16x64xf32> to vector<16x8xf32>
      %cst_23 = arith.constant dense<0xFF800000> : vector<16xf32>
      %40 = vector.multi_reduction <maximumf>, %39, %cst_23 [1] : vector<16x8xf32> to vector<16xf32>
      %41 = vector.extract_strided_slice %12 {offsets = [0, 48], sizes = [16, 8], strides = [1, 1]} : vector<16x64xf32> to vector<16x8xf32>
      %cst_24 = arith.constant dense<0xFF800000> : vector<16xf32>
      %42 = vector.multi_reduction <maximumf>, %41, %cst_24 [1] : vector<16x8xf32> to vector<16xf32>
      %43 = vector.extract_strided_slice %12 {offsets = [0, 56], sizes = [16, 8], strides = [1, 1]} : vector<16x64xf32> to vector<16x8xf32>
      %cst_25 = arith.constant dense<0xFF800000> : vector<16xf32>
      %44 = vector.multi_reduction <maximumf>, %43, %cst_25 [1] : vector<16x8xf32> to vector<16xf32>
      %cst_26 = arith.constant 1.250000e-01 : f32
      %45 = vector.broadcast %cst_26 : f32 to vector<16xf32>
      %46 = arith.mulf %14, %45 : vector<16xf32>
      %47 = arith.addf %46, %30 : vector<16xf32>
      %cst_27 = arith.constant 1.250000e-01 : f32
      %48 = vector.broadcast %cst_27 : f32 to vector<16xf32>
      %49 = arith.mulf %16, %48 : vector<16xf32>
      %50 = arith.addf %49, %32 : vector<16xf32>
      %cst_28 = arith.constant 1.250000e-01 : f32
      %51 = vector.broadcast %cst_28 : f32 to vector<16xf32>
      %52 = arith.mulf %18, %51 : vector<16xf32>
      %53 = arith.addf %52, %34 : vector<16xf32>
      %cst_29 = arith.constant 1.250000e-01 : f32
      %54 = vector.broadcast %cst_29 : f32 to vector<16xf32>
      %55 = arith.mulf %20, %54 : vector<16xf32>
      %56 = arith.addf %55, %36 : vector<16xf32>
      %cst_30 = arith.constant 1.250000e-01 : f32
      %57 = vector.broadcast %cst_30 : f32 to vector<16xf32>
      %58 = arith.mulf %22, %57 : vector<16xf32>
      %59 = arith.addf %58, %38 : vector<16xf32>
      %cst_31 = arith.constant 1.250000e-01 : f32
      %60 = vector.broadcast %cst_31 : f32 to vector<16xf32>
      %61 = arith.mulf %24, %60 : vector<16xf32>
      %62 = arith.addf %61, %40 : vector<16xf32>
      %cst_32 = arith.constant 1.250000e-01 : f32
      %63 = vector.broadcast %cst_32 : f32 to vector<16xf32>
      %64 = arith.mulf %26, %63 : vector<16xf32>
      %65 = arith.addf %64, %42 : vector<16xf32>
      %cst_33 = arith.constant 1.250000e-01 : f32
      %66 = vector.broadcast %cst_33 : f32 to vector<16xf32>
      %67 = arith.mulf %28, %66 : vector<16xf32>
      %68 = arith.addf %67, %44 : vector<16xf32>
      %69 = arith.addf %14, %16 : vector<16xf32>
      %70 = arith.maximumf %30, %32 : vector<16xf32>
      %cst_34 = arith.constant 6.250000e-02 : f32
      %71 = vector.broadcast %cst_34 : f32 to vector<16xf32>
      %72 = arith.mulf %69, %71 : vector<16xf32>
      %73 = arith.addf %72, %70 : vector<16xf32>
      %74 = arith.addf %18, %20 : vector<16xf32>
      %75 = arith.maximumf %34, %36 : vector<16xf32>
      %cst_35 = arith.constant 6.250000e-02 : f32
      %76 = vector.broadcast %cst_35 : f32 to vector<16xf32>
      %77 = arith.mulf %74, %76 : vector<16xf32>
      %78 = arith.addf %77, %75 : vector<16xf32>
      %79 = arith.addf %22, %24 : vector<16xf32>
      %80 = arith.maximumf %38, %40 : vector<16xf32>
      %cst_36 = arith.constant 6.250000e-02 : f32
      %81 = vector.broadcast %cst_36 : f32 to vector<16xf32>
      %82 = arith.mulf %79, %81 : vector<16xf32>
      %83 = arith.addf %82, %80 : vector<16xf32>
      %84 = arith.addf %26, %28 : vector<16xf32>
      %85 = arith.maximumf %42, %44 : vector<16xf32>
      %cst_37 = arith.constant 6.250000e-02 : f32
      %86 = vector.broadcast %cst_37 : f32 to vector<16xf32>
      %87 = arith.mulf %84, %86 : vector<16xf32>
      %88 = arith.addf %87, %85 : vector<16xf32>
      %89 = arith.addf %14, %16 : vector<16xf32>
      %90 = arith.maximumf %30, %32 : vector<16xf32>
      %91 = arith.addf %89, %18 : vector<16xf32>
      %92 = arith.maximumf %90, %34 : vector<16xf32>
      %93 = arith.addf %91, %20 : vector<16xf32>
      %94 = arith.maximumf %92, %36 : vector<16xf32>
      %cst_38 = arith.constant 3.125000e-02 : f32
      %95 = vector.broadcast %cst_38 : f32 to vector<16xf32>
      %96 = arith.mulf %93, %95 : vector<16xf32>
      %97 = arith.addf %96, %94 : vector<16xf32>
      %98 = arith.addf %22, %24 : vector<16xf32>
      %99 = arith.maximumf %38, %40 : vector<16xf32>
      %100 = arith.addf %98, %26 : vector<16xf32>
      %101 = arith.maximumf %99, %42 : vector<16xf32>
      %102 = arith.addf %100, %28 : vector<16xf32>
      %103 = arith.maximumf %101, %44 : vector<16xf32>
      %cst_39 = arith.constant 3.125000e-02 : f32
      %104 = vector.broadcast %cst_39 : f32 to vector<16xf32>
      %105 = arith.mulf %102, %104 : vector<16xf32>
      %106 = arith.addf %105, %103 : vector<16xf32>
      %107 = arith.addf %14, %16 : vector<16xf32>
      %108 = arith.maximumf %30, %32 : vector<16xf32>
      %109 = arith.addf %107, %18 : vector<16xf32>
      %110 = arith.maximumf %108, %34 : vector<16xf32>
      %111 = arith.addf %109, %20 : vector<16xf32>
      %112 = arith.maximumf %110, %36 : vector<16xf32>
      %113 = arith.addf %111, %22 : vector<16xf32>
      %114 = arith.maximumf %112, %38 : vector<16xf32>
      %115 = arith.addf %113, %24 : vector<16xf32>
      %116 = arith.maximumf %114, %40 : vector<16xf32>
      %117 = arith.addf %115, %26 : vector<16xf32>
      %118 = arith.maximumf %116, %42 : vector<16xf32>
      %119 = arith.addf %117, %28 : vector<16xf32>
      %120 = arith.maximumf %118, %44 : vector<16xf32>
      %cst_40 = arith.constant 1.562500e-02 : f32
      %121 = vector.broadcast %cst_40 : f32 to vector<16xf32>
      %122 = arith.mulf %119, %121 : vector<16xf32>
      %123 = arith.addf %122, %120 : vector<16xf32>
      %124 = vector.shape_cast %47 : vector<16xf32> to vector<1x16xf32>
      %125 = vector.shape_cast %50 : vector<16xf32> to vector<1x16xf32>
      %126 = vector.shape_cast %53 : vector<16xf32> to vector<1x16xf32>
      %127 = vector.shape_cast %56 : vector<16xf32> to vector<1x16xf32>
      %128 = vector.shape_cast %59 : vector<16xf32> to vector<1x16xf32>
      %129 = vector.shape_cast %62 : vector<16xf32> to vector<1x16xf32>
      %130 = vector.shape_cast %65 : vector<16xf32> to vector<1x16xf32>
      %131 = vector.shape_cast %68 : vector<16xf32> to vector<1x16xf32>
      %132 = vector.shape_cast %73 : vector<16xf32> to vector<1x16xf32>
      %133 = vector.shape_cast %78 : vector<16xf32> to vector<1x16xf32>
      %134 = vector.shape_cast %83 : vector<16xf32> to vector<1x16xf32>
      %135 = vector.shape_cast %88 : vector<16xf32> to vector<1x16xf32>
      %136 = vector.shape_cast %97 : vector<16xf32> to vector<1x16xf32>
      %137 = vector.shape_cast %106 : vector<16xf32> to vector<1x16xf32>
      %138 = vector.shape_cast %123 : vector<16xf32> to vector<1x16xf32>
      %139 = tpu.concatenate %124, %125, %126, %127, %128, %129, %130, %131, %132, %133, %134, %135, %136, %137, %138 in 0 : vector<1x16xf32>, vector<1x16xf32>, vector<1x16xf32>, vector<1x16xf32>, vector<1x16xf32>, vector<1x16xf32>, vector<1x16xf32>, vector<1x16xf32>, vector<1x16xf32>, vector<1x16xf32>, vector<1x16xf32>, vector<1x16xf32>, vector<1x16xf32>, vector<1x16xf32>, vector<1x16xf32> -> vector<15x16xf32>
      %c0_41 = arith.constant 0 : index
      %c0_42 = arith.constant 0 : index
      %c0_43 = arith.constant 0 : index
      %140 = vector.load %arg3[%c0_41, %c0_42, %c0_43] : memref<1x15x16xf32, #tpu.memory_space<vmem>>, vector<1x15x16xf32>
      %141 = vector.shape_cast %140 : vector<1x15x16xf32> to vector<15x16xf32>
      %142 = vector.shape_cast %139 : vector<15x16xf32> to vector<1x15x16xf32>
      tpu.vector_store %arg3[%c0_41, %c0_42, %c0_43], %142 {strides = array<i32>} : memref<1x15x16xf32, #tpu.memory_space<vmem>>, vector<1x15x16xf32>,
    } else {
    }
    return
  }
  func.func @transform_0(%arg0: i32, %arg1: i32) -> (i32, i32, i32, i32) {
    %c0_i32 = arith.constant 0 : i32
    %c0_i32_0 = arith.constant 0 : i32
    %c0_i32_1 = arith.constant 0 : i32
    return %arg0, %arg1, %c0_i32, %c0_i32_0 : i32, i32, i32, i32
  }
  func.func @transform_1(%arg0: i32, %arg1: i32) -> (i32, i32, i32) {
    %c0_i32 = arith.constant 0 : i32
    %c0_i32_0 = arith.constant 0 : i32
    %c0_i32_1 = arith.constant 0 : i32
    return %arg0, %c0_i32, %c0_i32_0 : i32, i32, i32
  }
}

</mosaic_0001>

<bundles_post_ra>
// kernel: tpu_custom_call.1
= control target key start
LH: loop header
LB: loop body
LE: loop exit
PB: predicated region body
PF: predicated region fallthrough
CT: control target
= control target key end

     0   :  { %6 = vsyncpa [#allocation4], 0  ;;  %s1302_s0 = inlined_call_operand.hbm [shape: f32[2,8,16,64], index: 0, kind: input, shape index: {}]   ;;  %s1303_s1 = inlined_call_operand.vmem [shape: f32[2,15,16], index: 1, kind: output, shape index: {}]  }
   0x1   :  { %8 = vsyncpa [#allocation4 + $0x1], 0  ;;  %s943_s6 = smov 0   ;;  %s945_s7 = smov 0  }
   0x2   :  { %s947_s8 = smov 0   ;;  %s949_s9 = smov 0  }
   0x3   :  { %s951_s10 = smov 0   ;;  %s953_s11 = smov 0  }
   0x4 LB: > { %s764_s12 = sadd.s32 4294967295, %s921_s11   ;;  %s26_s13 = sadd.s32 1, %s917_s10  ;;  %s921_s11 = sphi %s953_s11, %s14_s11   ;;  %s917_s10 = sphi %s951_s10, %s1311_s10   ;;  %s913_s9 = sphi %s949_s9, %s1310_s9   ;;  %s909_s8 = sphi %s947_s8, %s1309_s8   ;;  %s905_s7 = sphi %s945_s7, %s1308_s7   ;;  %s901_s6 = sphi %s943_s6, %s1307_s6  }
   0x5   : > { %p28_p0 = scmp.ge.s32.totalorder %s26_s13, 2  ;;  %s35_s14 = sadd.s32 1, %s909_s8 }
   0x6   : > { %p42_p1 = scmp.ne.s32.totalorder %s909_s8, %s905_s7  ;;  %p43_p2 = scmp.eq.s32.totalorder %s921_s11, 0 }
   0x7   : > { %s1313_s13 = smov (%p28_p0, %s26_s13), 0  ;;  %p48_p4 = scmp.ne.s32.totalorder %s905_s7, %s901_s6 }
   0x8   : > { %p979_p3 = por %p43_p2, %p42_p1  ;;  %s30_s16 = ssub.s32 %s917_s10, %s1313_s13 }
   0x9   : > { %p49_p5 = scmp.eq.s32.totalorder %s764_s12, 0  ;;  %p33_p6 = scmp.eq.s32.totalorder %s30_s16, 0 }
   0xa   : > { %p785_p8 = scmp.lt.s32.totalorder %s921_s11, 2  ;;  %s98_s19 = sand.u32 1, %s909_s8  }
   0xb   : > { %p986_p7 = por %p49_p5, %p48_p4  ;;  %s777_s20 = sshll.u32 %s917_s10, 11 }
   0xc   : > { %s992_s18 = scalar_select %p33_p6, %s909_s8, %s35_s14  }
   0xd   : > { %s768_s21 = sshll.u32 %s98_s19, 7  ;;  %s111_s24 = scalar_lea.hbm %s1302_s0, %s777_s20 }
   0xe   : > { %s102_s25 = scalar_lea.vmem [#allocation3], %s768_s21  ;;  %p1001_p9 = pnand %p785_p8, %p979_p3 }
   0xf   : > { %s112_s26 = sshll.u32 %s102_s25, 4  ;;  %s99_s28 = scalar_lea.sflag [#allocation4], %s98_s19  ;;  %s113_s26 = int_to_ptr.vmem [resolvable:$true] %s112_s26 }
  0x10   : > { %p845_p10 = pneg %p1001_p9  ;;  %s856_s29 = scalar_lea.vmem %s113_s26, 2048 }
  0x11   : > { %p857_p11 = scmp.ne.s32.totalorder %s113_s26, %s856_s29  ;;  %s923_s30 = smov [#allocation3]  }
  0x12   : > { %s861_s2 = sshll.u32 %s923_s30, 4  ;;  %s862_s2 = int_to_ptr.vmem [resolvable:$false] %s861_s2 }
  0x13   : > { %p859_p12 = pnand %p857_p11, %p845_p10  ;;  %s863_s3 = scalar_lea.vmem %s862_s2, 4096 }
  0x14   : > { %p864_p0 = scmp.lt.s32.totalorder %s113_s26, %s862_s2  ;;  %p865_p1 = scmp.lt.s32.totalorder %s863_s3, %s856_s29 }
  0x15   : > { %p860_p13 = pneg %p859_p12 }
  0x16   : > { %p866_p2 = por %p865_p1, %p864_p0 }
  0x18   : > { %p867_p3 = pnand %p866_p2, %p860_p13 }
  0x1a   : > { %870 = shalt.err (!%p867_p3)
}
  0x1b   : > { %s924_s4 = smov 128   ;;  %s925_s5 = smov 8  }
  0x1c   : > { %784 = dma.hbm_to_vmem [thread:$0]  (!%p1001_p9), %s111_s24, 2048, %s113_s26, %s99_s28, %s924_s4, %s924_s4, %s925_s5  }
  0x1d   : > { %p771_p4 = scmp.ge.s32.totalorder %s921_s11, 1  ;;  %p120_p5 = scmp.lt.s32.totalorder %s921_s11, 3 }
  0x1f   : > { %p121_p6 = pnand %p771_p4, %p120_p5 }
  0x20   : > { %s126_s6 = sand.u32 (!%p121_p6), 1, %s905_s7  }
  0x21   : > { %124 = sbr.rel (%p121_p6) target bundleno = 446 (0x1be), region = 24  ;;  %s772_s12 = sshll.u32 (!%p121_p6), %s126_s6, 7 }
  0x22   : > { %s127_s14 = scalar_lea.sflag (!%p121_p6), [#allocation4], %s126_s6  ;;  %s1012_s15 = scalar_lea.vmem (!%p121_p6), [#allocation3], %s772_s12 }
  0x26   : > { %896 = dma.done.wait (%p986_p7), %s127_s14, 2048  }
  0x27   : > { %898 = vsyncadd (%p986_p7), %s127_s14, 4294965248  ;;  %vm171_vm0 = vcmask 523264   ;;  %v155_v0 = vld [vmem:[%s1012_s15] sm:$0xff]  ;;  %v157_v1 = vld [vmem:[%s1012_s15 + $0x10] sm:$0xff]  ;;  %s926_s16 = smov 112   ;;  %s927_s17 = smov 120  }
  0x28   : > { %v159_v2 = vld [vmem:[%s1012_s15 + $0x20] sm:$0xff]  ;;  %v161_v3 = vld [vmem:[%s1012_s15 + $0x30] sm:$0xff]  ;;  %v172_v6 = vsel %vm171_vm0, %v155_v0, -inf  ;;  %v173_v7 = vsel %vm171_vm0, %v157_v1, -inf  ;;  %v156_v15 = vld [vmem:[%s1012_s15 + $0x8] sm:$0xff]  ;;  %s928_s19 = smov 104  }
  0x29   : > { %v163_v4 = vld [vmem:[%s1012_s15 + $0x40] sm:$0xff]  ;;  %v165_v5 = vld [vmem:[%s1012_s15 + $0x50] sm:$0xff]  ;;  %v174_v8 = vsel %vm171_vm0, %v159_v2, -inf  ;;  %v176_v12 = vsel %vm171_vm0, %v161_v3, -inf  ;;  %v158_v19 = vld [vmem:[%s1012_s15 + $0x18] sm:$0xff]  ;;  %v187_v22 = vsel %vm171_vm0, %v156_v15, -inf }
  0x2a   : > { %v167_v9 = vld [vmem:[%s1012_s15 + $0x60] sm:$0xff]  ;;  %v169_v10 = vld [vmem:[%s1012_s15 + $0x70] sm:$0xff]  ;;  %v175_v11 = vmax.f32 %v172_v6, %v174_v8  ;;  %v178_v13 = vsel %vm171_vm0, %v163_v4, -inf  ;;  %v180_v14 = vsel %vm171_vm0, %v165_v5, -inf  ;;  %v177_v16 = vmax.f32 %v173_v7, %v176_v12  ;;  %v160_v20 = vld [vmem:[%s1012_s15 + $0x28] sm:$0xff]  ;;  %s929_s20 = smov 80  }
  0x2b   : > { %v182_v17 = vsel %vm171_vm0, %v167_v9, -inf  ;;  %v184_v18 = vsel %vm171_vm0, %v169_v10, -inf  ;;  %v162_v21 = vld [vmem:[%s1012_s15 + $0x38] sm:$0xff]  ;;  %v164_v24 = vld [vmem:[%s1012_s15 + $0x48] sm:$0xff]  ;;  %v188_v27 = vsel %vm171_vm0, %v158_v19, -inf  ;;  %v189_v28 = vsel %vm171_vm0, %v160_v20, -inf }
  0x2c   : > { %v179_v23 = vmax.f32 %v175_v11, %v178_v13  ;;  %v166_v25 = vld [vmem:[%s1012_s15 + $0x58] sm:$0xff]  ;;  %v168_v26 = vld [vmem:[%s1012_s15 + $0x68] sm:$0xff]  ;;  %v191_v29 = vsel %vm171_vm0, %v162_v21, -inf  ;;  %v181_v30 = vmax.f32 %v177_v16, %v180_v14  ;;  %v190_v32 = vmax.f32 %v187_v22, %v189_v28  ;;  %s930_s21 = smov 96   ;;  %s931_s22 = smov 88  }
  0x2d   : > { %v170_v31 = vld [vmem:[%s1012_s15 + $0x78] sm:$0xff]  ;;  %v192_v33 = vmax.f32 %v188_v27, %v191_v29  ;;  %v193_v34 = vsel %vm171_vm0, %v164_v24, -inf  ;;  %v195_v36 = vsel %vm171_vm0, %v166_v25, -inf  ;;  %v197_v37 = vsel %vm171_vm0, %v168_v26, -inf  ;;  %s932_s23 = smov 72   ;;  %p150_p7 = scmp.lt.s32.totalorder %s913_s9, 1 }
  0x2e   : > { %v183_v35 = vmax.f32 %v179_v23, %v182_v17  ;;  %v199_v38 = vsel %vm171_vm0, %v170_v31, -inf  ;;  %v185_v39 = vmax.f32 %v181_v30, %v184_v18  ;;  %v194_v40 = vmax.f32 %v190_v32, %v193_v34 }
  0x2f   : > { %v196_v41 = vmax.f32 %v192_v33, %v195_v36  ;;  %vm223_vm1 = vcmask 64512   ;;  %vm322_vm2 = vcmask 130112   ;;  %vm329_vm3 = vcmask 195712   ;;  %s1315_s9 = smov (!%p150_p7, %s913_s9), 1 }
  0x30   : > { %v186_v42 = vmax.f32 %v183_v35, %v185_v39  ;;  %v198_v43 = vmax.f32 %v194_v40, %v197_v37  ;;  %vm336_vm4 = vcmask 261312   ;;  %vm343_vm5 = vcmask 326912   ;;  %s778_s24 = sshll.u32 %s1315_s9, 4 }
  0x31   : > { %v200_v44 = vmax.f32 %v196_v41, %v199_v38  ;;  %vm350_vm6 = vcmask 392512   ;;  %vm357_vm7 = vcmask 458112   ;;  %vm364_vm8 = vcmask 523712   ;;  %s154_s26 = scalar_lea.vmem %s1303_s1, %s778_s24 }
  0x32   : > { %206 = vst.msk [vmem:[#allocation2] sm:$0xff] %vm171_vm0, %v186_v42  ;;  %vm662_vm9 = vcmask 1040384   ;;  %vm664_vm10 = vcmask 1041408   ;;  %vm666_vm11 = vcmask 1042432   ;;  %vm668_vm12 = vcmask 1043456  }
  0x33   : > { %v201_v45 = vmax.f32 %v198_v43, %v200_v44  ;;  %v481_v43 = vlaneseq  ;;  %vm670_vm13 = vcmask 1044480   ;;  %vm672_vm14 = vcmask 1045504  }
  0x34   : > { %vm674_vm15 = vcmask 1046528  }
  0x35   : > { %207 = vst.msk [vmem:[#allocation2 + $0x8] sm:$0xff] %vm171_vm0, %v201_v45  ;;  %vm682_vm0 = vcmask 130048  }
  0x39   : > { %v1052_v46 = vld [vmem:[#allocation2] sm:$0xff] }
  0x3a   : > { %244 = vrot.lane.b32.xlu0 %v1052_v46, %s926_s16  ;;  %232 = vrot.lane.b32.xlu1 %v1052_v46, %s927_s17  ;;  %v224_v48 = vsel %vm223_vm1, %v1052_v46, 0.0  ;;  %v316_v14 = vsel %vm223_vm1, %v1052_v46, -inf  ;;  %v323_v17 = vsel %vm322_vm2, %v1052_v46, -inf  ;;  %v330_v19 = vsel %vm329_vm3, %v1052_v46, -inf }
  0x3b   : > { %v337_v21 = vsel %vm336_vm4, %v1052_v46, -inf  ;;  %v344_v23 = vsel %vm343_vm5, %v1052_v46, -inf  ;;  %v351_v25 = vsel %vm350_vm6, %v1052_v46, -inf  ;;  %v358_v27 = vsel %vm357_vm7, %v1052_v46, -inf }
  0x3c   : > { %v1056_v47 = vld [vmem:[#allocation2 + $0x8] sm:$0xff]  ;;  %v365_v29 = vsel %vm364_vm8, %v1052_v46, -inf }
  0x3d   : > { %v227_v49 = vsel %vm223_vm1, %v1056_v47, 0.0  ;;  %v319_v18 = vsel %vm223_vm1, %v1056_v47, -inf  ;;  %v326_v20 = vsel %vm322_vm2, %v1056_v47, -inf  ;;  %v333_v22 = vsel %vm329_vm3, %v1056_v47, -inf }
  0x3e   : > { %234 = vrot.lane.b32.xlu1 %v1056_v47, %s927_s17  ;;  %v340_v24 = vsel %vm336_vm4, %v1056_v47, -inf  ;;  %v347_v26 = vsel %vm343_vm5, %v1056_v47, -inf  ;;  %v354_v28 = vsel %vm350_vm6, %v1056_v47, -inf  ;;  %v361_v30 = vsel %vm357_vm7, %v1056_v47, -inf }
  0x3f   : > { %v368_v31 = vsel %vm364_vm8, %v1056_v47, -inf }
  0x42   : > { %256 = vrot.lane.b32.xlu1 %v1052_v46, %s928_s19 }
  0x46   : > { %258 = vrot.lane.b32.xlu1 %v1056_v47, %s928_s19 }
  0x4a   : > { %292 = vrot.lane.b32.xlu1 %v1052_v46, %s929_s20 }
  0x59   : > { %225 = vadd.xlane.f32.xlu0 %v224_v48 }
  0x5d   : > { %228 = vadd.xlane.f32.xlu0 %v227_v49 }
  0x73   : > { %246 = vrot.lane.b32.xlu0 %v1056_v47, %s926_s16 }
  0x77   : > { %268 = vrot.lane.b32.xlu0 %v1052_v46, %s930_s21 }
  0x7b   : > { %270 = vrot.lane.b32.xlu0 %v1056_v47, %s930_s21 }
  0x7f   : > { %280 = vrot.lane.b32.xlu0 %v1052_v46, %s931_s22 }
  0x83   : > { %282 = vrot.lane.b32.xlu0 %v1056_v47, %s931_s22 }
  0x87   : > { %294 = vrot.lane.b32.xlu0 %v1056_v47, %s929_s20 }
  0x8b   : > { %304 = vrot.lane.b32.xlu0 %v1052_v46, %s932_s23  ;;  %v482_v46 = vand.u32 127, %v481_v43 }
  0x8d   : > { %v487_v49 = vadd.s32 4294967288, %v482_v46 }
  0x8f   : > { %306 = vrot.lane.b32.xlu0 %v1056_v47, %s932_s23  ;;  %v484_v47 = vshrl.u32 %v481_v43, 7 }
  0xac   : > { %v233_v50 = vpop.permute.xlu1 %232  ;;  %v245_v52 = vpop.permute.xlu0 %244 }
  0xad   : > { %v238_v51 = vsel %vm223_vm1, %v233_v50, 0.0  ;;  %v250_v55 = vsel %vm223_vm1, %v245_v52, 0.0 }
  0xae   : > { %239 = vadd.xlane.f32.xlu0 %v238_v51 }
  0xb0   : > { %v235_v53 = vpop.permute.xlu1 %234 }
  0xb1   : > { %v241_v54 = vsel %vm223_vm1, %v235_v53, 0.0 }
  0xb2   : > { %242 = vadd.xlane.f32.xlu1 %v241_v54  ;;  %251 = vadd.xlane.f32.xlu0 %v250_v55 }
  0xb4   : > { %v257_v56 = vpop.permute.xlu1 %256 }
  0xb5   : > { %v262_v57 = vsel %vm223_vm1, %v257_v56, 0.0 }
  0xb6   : > { %263 = vadd.xlane.f32.xlu0 %v262_v57 }
  0xb8   : > { %v259_v61 = vpop.permute.xlu1 %258 }
  0xb9   : > { %v265_v63 = vsel %vm223_vm1, %v259_v61, 0.0 }
  0xbc   : > { %v293_v7 = vpop.permute.xlu1 %292 }
  0xbd   : > { %v298_v9 = vsel %vm223_vm1, %v293_v7, 0.0 }
  0xe2   : > { %v1078_v58 = vpop.xlane.xlu0 %225 }
  0xe3   : > { %v1117_v52 = vmul.f32 0.125, %v1078_v58 }
  0xe6   : > { %v1080_v59 = vpop.xlane.xlu0 %228 }
  0xe7   : > { %v372_v55 = vmul.f32 0.125, %v1080_v59 }
  0xea   : > { %v247_v60 = vpop.permute.xlu0 %246 }
  0xeb   : > { %v253_v62 = vsel %vm223_vm1, %v247_v60, 0.0 }
  0xec   : > { %254 = vadd.xlane.f32.xlu1 %v253_v62 }
  0xee   : > { %v269_v0 = vpop.permute.xlu0 %268 }
  0xef   : > { %v274_v1 = vsel %vm223_vm1, %v269_v0, 0.0  ;;  %v1126_v0 = vsub.s32 %v487_v49, %v484_v47 }
  0xf0   : > { %266 = vadd.xlane.f32.xlu1 %v265_v63  ;;  %275 = vadd.xlane.f32.xlu0 %v274_v1  ;;  %v1124_v63 = vsub.s32 %v482_v46, %v484_v47 }
  0xf2   : > { %v271_v2 = vpop.permute.xlu0 %270 }
  0xf3   : > { %v277_v3 = vsel %vm223_vm1, %v271_v2, 0.0 }
  0xf4   : > { %278 = vadd.xlane.f32.xlu1 %v277_v3 }
  0xf6   : > { %v281_v4 = vpop.permute.xlu0 %280 }
  0xf7   : > { %v286_v5 = vsel %vm223_vm1, %v281_v4, 0.0 }
  0xf8   : > { %287 = vadd.xlane.f32.xlu0 %v286_v5 }
  0xfa   : > { %v283_v6 = vpop.permute.xlu0 %282 }
  0xfb   : > { %v289_v8 = vsel %vm223_vm1, %v283_v6, 0.0 }
  0xfc   : > { %290 = vadd.xlane.f32.xlu0 %v289_v8 }
  0xfe   : > { %v295_v10 = vpop.permute.xlu0 %294 }
  0xff   : > { %v301_v11 = vsel %vm223_vm1, %v295_v10, 0.0 }
 0x100   : > { %299 = vadd.xlane.f32.xlu0 %v298_v9  ;;  %302 = vadd.xlane.f32.xlu1 %v301_v11 }
 0x102   : > { %v305_v12 = vpop.permute.xlu0 %304 }
 0x103   : > { %v310_v13 = vsel %vm223_vm1, %v305_v12, 0.0 }
 0x104   : > { %311 = vadd.xlane.f32.xlu0 %v310_v13 }
 0x106   : > { %v307_v15 = vpop.permute.xlu0 %306 }
 0x107   : > { %v313_v16 = vsel %vm223_vm1, %v307_v15, 0.0  ;;  %vm684_vm1 = vcmask 129024  }
 0x108   : > { %317 = vmax.xlane.f32.xlu0 %v316_v14  ;;  %314 = vadd.xlane.f32.xlu1 %v313_v16 }
 0x10c   : > { %324 = vmax.xlane.f32.xlu0 %v323_v17  ;;  %320 = vmax.xlane.f32.xlu1 %v319_v18 }
 0x110   : > { %331 = vmax.xlane.f32.xlu0 %v330_v19  ;;  %327 = vmax.xlane.f32.xlu1 %v326_v20 }
 0x114   : > { %338 = vmax.xlane.f32.xlu0 %v337_v21  ;;  %334 = vmax.xlane.f32.xlu1 %v333_v22 }
 0x118   : > { %345 = vmax.xlane.f32.xlu0 %v344_v23  ;;  %341 = vmax.xlane.f32.xlu1 %v340_v24 }
 0x11c   : > { %352 = vmax.xlane.f32.xlu0 %v351_v25  ;;  %348 = vmax.xlane.f32.xlu1 %v347_v26 }
 0x120   : > { %359 = vmax.xlane.f32.xlu0 %v358_v27  ;;  %355 = vmax.xlane.f32.xlu1 %v354_v28 }
 0x124   : > { %366 = vmax.xlane.f32.xlu0 %v365_v29  ;;  %362 = vmax.xlane.f32.xlu1 %v361_v30 }
 0x128   : > { %369 = vmax.xlane.f32.xlu1 %v368_v31 }
 0x137   : > { %v240_v32 = vpop.xlane.xlu0 %239 }
 0x138   : > { %v403_v48 = vadd.f32 %v240_v32, %v1078_v58  ;;  %v375_v61 = vmul.f32 0.125, %v240_v32 }
 0x13a   : > { %v1122_v62 = vmul.f32 0.0625, %v403_v48 }
 0x13b   : > { %v252_v33 = vpop.xlane.xlu0 %251  ;;  %v243_v34 = vpop.xlane.xlu1 %242 }
 0x13c   : > { %v404_v50 = vadd.f32 %v243_v34, %v1080_v59  ;;  %v435_v51 = vadd.f32 %v403_v48, %v252_v33  ;;  %v376_v1 = vmul.f32 0.125, %v243_v34  ;;  %v379_v5 = vmul.f32 0.125, %v252_v33 }
 0x13e   : > { %v408_v4 = vmul.f32 0.0625, %v404_v50 }
 0x13f   : > { %v264_v35 = vpop.xlane.xlu0 %263 }
 0x140   : > { %v411_v56 = vadd.f32 %v264_v35, %v252_v33  ;;  %v439_v57 = vadd.f32 %v435_v51, %v264_v35  ;;  %v383_v6 = vmul.f32 0.125, %v264_v35 }
 0x142   : > { %v1128_v9 = vmul.f32 0.0625, %v411_v56  ;;  %v1130_v10 = vmul.f32 0.03125, %v439_v57 }
 0x175   : > { %v255_v36 = vpop.xlane.xlu1 %254 }
 0x176   : > { %v436_v60 = vadd.f32 %v404_v50, %v255_v36  ;;  %v380_v11 = vmul.f32 0.125, %v255_v36 }
 0x179   : > { %v276_v37 = vpop.xlane.xlu0 %275  ;;  %v267_v39 = vpop.xlane.xlu1 %266 }
 0x17a   : > { %v412_v2 = vadd.f32 %v267_v39, %v255_v36  ;;  %v440_v3 = vadd.f32 %v436_v60, %v267_v39  ;;  %v459_v58 = vadd.f32 %v439_v57, %v276_v37  ;;  %v384_v13 = vmul.f32 0.125, %v267_v39 }
 0x17b   : > { %v1132_v14 = vmul.f32 0.125, %v276_v37 }
 0x17c   : > { %v1134_v17 = vmul.f32 0.0625, %v412_v2  ;;  %v1136_v18 = vmul.f32 0.03125, %v440_v3 }
 0x17d   : > { %v279_v41 = vpop.xlane.xlu1 %278 }
 0x17e   : > { %v460_v15 = vadd.f32 %v440_v3, %v279_v41  ;;  %v1138_v21 = vmul.f32 0.125, %v279_v41 }
 0x181   : > { %v288_v38 = vpop.xlane.xlu0 %287 }
 0x182   : > { %v419_v7 = vadd.f32 %v288_v38, %v276_v37  ;;  %v463_v12 = vadd.f32 %v459_v58, %v288_v38  ;;  %v1140_v22 = vmul.f32 0.125, %v288_v38 }
 0x184   : > { %v1142_v23 = vmul.f32 0.0625, %v419_v7 }
 0x185   : > { %v291_v40 = vpop.xlane.xlu0 %290 }
 0x186   : > { %v420_v16 = vadd.f32 %v291_v40, %v279_v41  ;;  %v464_v24 = vadd.f32 %v460_v15, %v291_v40  ;;  %v1149_v31 = vmul.f32 0.125, %v291_v40 }
 0x188   : > { %v1151_v32 = vmul.f32 0.0625, %v420_v16 }
 0x189   : > { %v300_v42 = vpop.xlane.xlu0 %299  ;;  %v303_v44 = vpop.xlane.xlu1 %302 }
 0x18a   : > { %v447_v19 = vadd.f32 %v419_v7, %v300_v42  ;;  %v467_v20 = vadd.f32 %v463_v12, %v300_v42  ;;  %v448_v27 = vadd.f32 %v420_v16, %v303_v44  ;;  %v1153_v33 = vmul.f32 0.125, %v303_v44 }
 0x18b   : > { %v468_v34 = vadd.f32 %v464_v24, %v303_v44  ;;  %v1155_v35 = vmul.f32 0.125, %v300_v42 }
 0x18d   : > { %v1112_v45 = vpop.xlane.xlu0 %311 }
 0x18e   : > { %v427_v28 = vadd.f32 %v1112_v45, %v300_v42  ;;  %v451_v29 = vadd.f32 %v447_v19, %v1112_v45  ;;  %v471_v30 = vadd.f32 %v467_v20, %v1112_v45  ;;  %v1160_v40 = vmul.f32 0.125, %v1112_v45 }
 0x190   : > { %v1162_v47 = vmul.f32 0.0625, %v427_v28  ;;  %v1164_v49 = vmul.f32 0.03125, %v451_v29  ;;  %v1166_v42 = vmul.f32 0.015625, %v471_v30 }
 0x191   : > { %v1119_v53 = vpop.xlane.xlu1 %314  ;;  %v318_v54 = vpop.xlane.xlu0 %317 }
 0x192   : > { %v428_v36 = vadd.f32 %v1119_v53, %v303_v44  ;;  %v452_v37 = vadd.f32 %v448_v27, %v1119_v53  ;;  %v472_v50 = vadd.f32 %v468_v34, %v1119_v53  ;;  %v373_v51 = vadd.f32 %v1117_v52, %v318_v54 }
 0x193   : > { %v1171_v56 = vmul.f32 0.125, %v1119_v53 }
 0x194   : > { %v1173_v57 = vmul.f32 0.0625, %v428_v36  ;;  %v1175_v45 = vmul.f32 0.03125, %v452_v37  ;;  %v486_v15 = vrot.slane %v373_v51, %v1124_v63  ;;  %v1196_v34 = vmul.f32 0.015625, %v472_v50 }
 0x195   : > { %v321_v8 = vpop.xlane.xlu1 %320  ;;  %v325_v59 = vpop.xlane.xlu0 %324 }
 0x196   : > { %v374_v39 = vadd.f32 %v372_v55, %v321_v8  ;;  %v405_v41 = vmax.f32 %v318_v54, %v325_v59  ;;  %v377_v55 = vadd.f32 %v375_v61, %v325_v59 }
 0x198   : > { %v491_v2 = vrot.slane %v374_v39, %v1126_v0  ;;  %v409_v3 = vadd.f32 %v1122_v62, %v405_v41 }
 0x199   : > { %v328_v25 = vpop.xlane.xlu1 %327  ;;  %v1144_v26 = vpop.xlane.xlu0 %331 }
 0x19a   : > { %v406_v38 = vmax.f32 %v321_v8, %v328_v25  ;;  %v378_v43 = vadd.f32 %v376_v1, %v328_v25  ;;  %v381_v1 = vadd.f32 %v379_v5, %v1144_v26  ;;  %v492_v36 = vsel %vm322_vm2, %v491_v2, %v486_v15 }
 0x19c   : > { %v410_v60 = vadd.f32 %v408_v4, %v406_v38  ;;  %v503_v58 = vrot.slane %v378_v43, %v1126_v0  ;;  %v437_v4 = vmax.f32 %v405_v41, %v1144_v26  ;;  %v511_v16 = vrot.slane %v381_v1, %v1124_v63 }
 0x19d   : > { %v335_v46 = vpop.xlane.xlu1 %334  ;;  %v339_v48 = vpop.xlane.xlu0 %338 }
 0x19e   : > { %v382_v44 = vadd.f32 %v380_v11, %v335_v46  ;;  %v438_v7 = vmax.f32 %v406_v38, %v335_v46  ;;  %v385_v61 = vadd.f32 %v383_v6, %v339_v48  ;;  %v499_v11 = vrot.slane %v377_v55, %v1124_v63 }
 0x19f   : > { %v413_v5 = vmax.f32 %v1144_v26, %v339_v48  ;;  %v587_v62 = vrot.slane %v410_v60, %v1126_v0  ;;  %v583_v6 = vrot.slane %v409_v3, %v1124_v63  ;;  %v441_v20 = vmax.f32 %v437_v4, %v339_v48 }
 0x1a0   : > { %v515_v53 = vrot.slane %v382_v44, %v1126_v0  ;;  %v523_v28 = vrot.slane %v385_v61, %v1124_v63 }
 0x1a1   : > { %v342_v52 = vpop.xlane.xlu1 %341  ;;  %v346_v54 = vpop.xlane.xlu0 %345  ;;  %v417_v37 = vadd.f32 %v1128_v9, %v413_v5  ;;  %v1211_v43 = vadd.f32 %v1130_v10, %v441_v20 }
 0x1a2   : > { %v386_v8 = vadd.f32 %v384_v13, %v342_v52  ;;  %v414_v59 = vmax.f32 %v335_v46, %v342_v52  ;;  %v442_v12 = vmax.f32 %v438_v7, %v342_v52  ;;  %v504_v13 = vsel %vm322_vm2, %v503_v58, %v499_v11 }
 0x1a3   : > { %v516_v26 = vsel %vm322_vm2, %v515_v53, %v511_v16  ;;  %v389_v29 = vadd.f32 %v1132_v14, %v346_v54  ;;  %v663_v39 = vsel %vm662_vm9, %v492_v36, %v504_v13  ;;  %v595_v60 = vrot.slane %v417_v37, %v1124_v63 }
 0x1a4   : > { %v527_v19 = vrot.slane %v386_v8, %v1126_v0  ;;  %v418_v24 = vadd.f32 %v1134_v17, %v414_v59  ;;  %v1201_v38 = vadd.f32 %v1136_v18, %v442_v12  ;;  %v1204_v17 = vsel %vm322_vm2, %v587_v62, %v583_v6 }
 0x1a5   : > { %v349_v25 = vpop.xlane.xlu1 %348  ;;  %v353_v27 = vpop.xlane.xlu0 %352  ;;  %v535_v44 = vrot.slane %v389_v29, %v1124_v63  ;;  %v461_v2 = vmax.f32 %v441_v20, %v346_v54 }
 0x1a6   : > { %v390_v30 = vadd.f32 %v1138_v21, %v349_v25  ;;  %v528_v41 = vsel %vm322_vm2, %v527_v19, %v523_v28  ;;  %v665_v21 = vsel %vm664_vm10, %v663_v39, %v516_v26  ;;  %v599_v9 = vrot.slane %v418_v24, %v1126_v0 }
 0x1a7   : > { %v421_v18 = vmax.f32 %v346_v54, %v353_v27  ;;  %v393_v50 = vadd.f32 %v1140_v22, %v353_v27  ;;  %v635_v1 = vrot.slane %v1201_v38, %v1126_v0  ;;  %v667_v10 = vsel %vm666_vm11, %v665_v21, %v528_v41 }
 0x1a8   : > { %v539_v14 = vrot.slane %v390_v30, %v1126_v0  ;;  %v462_v3 = vmax.f32 %v442_v12, %v349_v25  ;;  %v600_v7 = vsel %vm322_vm2, %v599_v9, %v595_v60  ;;  %v465_v53 = vmax.f32 %v461_v2, %v353_v27 }
 0x1a9   : > { %v356_v46 = vpop.xlane.xlu1 %355  ;;  %v360_v48 = vpop.xlane.xlu0 %359  ;;  %v425_v52 = vadd.f32 %v1142_v23, %v421_v18  ;;  %v547_v59 = vrot.slane %v393_v50, %v1124_v63 }
 0x1aa   : > { %v394_v51 = vadd.f32 %v1149_v31, %v356_v46  ;;  %v422_v55 = vmax.f32 %v349_v25, %v356_v46  ;;  %v540_v58 = vsel %vm322_vm2, %v539_v14, %v535_v44  ;;  %v397_v31 = vadd.f32 %v1155_v35, %v360_v48 }
 0x1ab   : > { %v466_v11 = vmax.f32 %v462_v3, %v356_v46  ;;  %v449_v5 = vmax.f32 %v421_v18, %v360_v48  ;;  %v669_v35 = vsel %vm668_vm12, %v667_v10, %v540_v58  ;;  %v469_v12 = vmax.f32 %v465_v53, %v360_v48 }
 0x1ac   : > { %v551_v22 = vrot.slane %v394_v51, %v1126_v0  ;;  %v426_v61 = vadd.f32 %v1151_v32, %v422_v55  ;;  %v559_v62 = vrot.slane %v397_v31, %v1124_v63  ;;  %v607_v25 = vrot.slane %v425_v52, %v1124_v63 }
 0x1ad   : > { %v363_v8 = vpop.xlane.xlu1 %362  ;;  %v367_v54 = vpop.xlane.xlu0 %366 }
 0x1ae   : > { %v398_v4 = vadd.f32 %v1153_v33, %v363_v8  ;;  %v401_v23 = vadd.f32 %v1160_v40, %v367_v54  ;;  %v429_v15 = vmax.f32 %v360_v48, %v367_v54  ;;  %v552_v32 = vsel %vm322_vm2, %v551_v22, %v547_v59 }
 0x1af   : > { %v453_v19 = vmax.f32 %v449_v5, %v367_v54  ;;  %v611_v33 = vrot.slane %v426_v61, %v1126_v0  ;;  %v473_v13 = vmax.f32 %v469_v12, %v367_v54  ;;  %v450_v20 = vmax.f32 %v422_v55, %v363_v8 }
 0x1b0   : > { %v563_v16 = vrot.slane %v398_v4, %v1126_v0  ;;  %v433_v6 = vadd.f32 %v1162_v47, %v429_v15  ;;  %v470_v27 = vmax.f32 %v466_v11, %v363_v8  ;;  %v671_v28 = vsel %vm670_vm13, %v669_v35, %v552_v32 }
 0x1b1   : > { %v370_v24 = vpop.xlane.xlu1 %369  ;;  %v571_v30 = vrot.slane %v401_v23, %v1124_v63  ;;  %v457_v37 = vadd.f32 %v1164_v49, %v453_v19  ;;  %v612_v14 = vsel %vm322_vm2, %v611_v33, %v607_v25  ;;  %v477_v21 = vadd.f32 %v1166_v42, %v473_v13 }
 0x1b2   : > { %v402_v40 = vadd.f32 %v1171_v56, %v370_v24  ;;  %v430_v26 = vmax.f32 %v363_v8, %v370_v24  ;;  %v564_v29 = vsel %vm322_vm2, %v563_v16, %v559_v62  ;;  %v454_v36 = vmax.f32 %v450_v20, %v370_v24 }
 0x1b3   : > { %v474_v39 = vmax.f32 %v470_v27, %v370_v24  ;;  %v619_v56 = vrot.slane %v433_v6, %v1124_v63  ;;  %v673_v46 = vsel %vm672_vm14, %v671_v28, %v564_v29  ;;  %v631_v48 = vrot.slane %v1211_v43, %v1124_v63 }
 0x1b4   : > { %v434_v47 = vadd.f32 %v1173_v57, %v430_v26  ;;  %v575_v41 = vrot.slane %v402_v40, %v1126_v0  ;;  %v458_v9 = vadd.f32 %v1175_v45, %v454_v36  ;;  %v676_v42 = vsel %vm662_vm9, %v1204_v17, %v600_v7 }
 0x1b5   : > { %v478_v18 = vadd.f32 %v1196_v34, %v474_v39  ;;  %v677_v45 = vsel %vm664_vm10, %v676_v42, %v612_v14  ;;  %v643_v34 = vrot.slane %v457_v37, %v1124_v63  ;;  %v636_v43 = vsel %vm322_vm2, %v635_v1, %v631_v48 }
 0x1b6   : > { %v576_v49 = vsel %vm322_vm2, %v575_v41, %v571_v30  ;;  %v623_v57 = vrot.slane %v434_v47, %v1126_v0  ;;  %v647_v44 = vrot.slane %v458_v9, %v1126_v0  ;;  %v655_v17 = vrot.slane %v477_v21, %v1124_v63 }
 0x1b7   : > { %v675_v50 = vsel %vm674_vm15, %v673_v46, %v576_v49  ;;  %v659_v55 = vrot.slane %v478_v18, %v1126_v0 }
 0x1b8   : > { %v624_v51 = vsel %vm322_vm2, %v623_v57, %v619_v56  ;;  %683 = vst.msk [vmem:[%s154_s26] sm:$0xff] %vm682_vm0, %v675_v50  ;;  %v648_v10 = vsel %vm322_vm2, %v647_v44, %v643_v34 }
 0x1b9   : > { %v678_v60 = vsel %vm666_vm11, %v677_v45, %v624_v51  ;;  %v660_v3 = vsel %vm322_vm2, %v659_v55, %v655_v17 }
 0x1ba   : > { %v679_v2 = vsel %vm668_vm12, %v678_v60, %v636_v43 }
 0x1bb   : > { %v680_v58 = vsel %vm670_vm13, %v679_v2, %v648_v10 }
 0x1bc   : > { %v681_v22 = vsel %vm672_vm14, %v680_v58, %v660_v3 }
 0x1bd   : > { %685 = vst.msk [vmem:[%s154_s26 + $0x8] sm:$0x7f] %vm684_vm1, %v681_v22 }
 0x1be PF: > { %s14_s11 = sadd.s32 1, %s921_s11   ;;  %s1307_s6 = smov %s905_s7 }
 0x1bf   : > { %p11_p8 = scmp.ge.s32.totalorder %s14_s11, 4   ;;  %s1308_s7 = smov %s909_s8 }
 0x1c0   : > { %s1309_s8 = smov %s992_s18  ;;  %s1310_s9 = smov %s917_s10 }
 0x1c1   : > { %s1311_s10 = smov %s1313_s13  ;;  %13 = sbr.rel (!%p11_p8) target bundleno = 4 (0x4), region = 76 }
 0x1c6   :  { %707 = vsyncpa [#allocation4], 1 }
 0x1c7   :  { %709 = vsyncpa [#allocation4 + $0x1], 1 }

</bundles_post_ra>
